<compile_context>
chip_gen: v7x
topology: tpu7x:2x2x1
jax: 0.10.0
libtpu: 0.0.40
codegen_flags: <defaults>
</compile_context>

<pallas_src>
import jax
import jax.numpy as jnp
from jax.experimental import pallas as pl
from jax.experimental.pallas import tpu as pltpu

IN_FEATURES = 784          # 1 * 28 * 28
N_PAD = 128                # lane-dense output width
OUT_FEATURES = 10


def mlp_kernel(x_ref, wc_ref, bc_ref, o_ref):
    # Single MXU matmul (f32 accumulation) + f32 bias add; bf16 lane-dense store.
    acc = jnp.dot(x_ref[...], wc_ref[...], preferred_element_type=jnp.float32)
    o_ref[...] = (acc + bc_ref[...]).astype(o_ref.dtype)


def collapse_params(params):
    """Fold the 3 affine layers into one (done once, at param-load time).

    Wc = W1 @ W2 @ W3 (784, 10); bc = (b1 @ W2 + b2) @ W3 + b3 (1, 10).
    Only N is zero-padded to 128 (lane-dense output); K stays 784 so the
    kernel can read un-padded activations directly. Wc stays f32: it is
    resident in VMEM and the kernel is activation-bandwidth bound.
    """
    w1, b1, w2, b2, w3, b3 = params
    wc = (w1 @ w2) @ w3                       # (784, 10) f32
    bc = (b1 @ w2 + b2) @ w3 + b3             # (1, 10)  f32
    wc = jnp.pad(wc, ((0, 0), (0, N_PAD - OUT_FEATURES)))
    bc = jnp.pad(bc, ((0, 0), (0, N_PAD - OUT_FEATURES)))
    return wc.astype(jnp.float32), bc.astype(jnp.float32)


def _cdiv(a, b):
    return -(-a // b)


def _round_up(x, m):
    return _cdiv(x, m) * m


def _choose_tiling(batch, max_tile_b):
    """Pick (tile_b, b_pad, num_tiles).

    * num_tiles = cdiv(B, max_tile_b) bounds padding waste to < 8 rows/tile
      (the old round_up(B, tile_b) rule could nearly double HBM traffic for
      unlucky B, e.g. B = 520 -> 1024).
    * For B > 128 force >= 2 grid steps so dimension_semantics=("parallel",)
      can shard across v7x's two TensorCores (free on single-TC v5e/v6e).
    """
    min_tiles = 2 if batch > 128 else 1
    num_tiles = max(min_tiles, _cdiv(batch, max_tile_b))
    tile_b = _round_up(_cdiv(batch, num_tiles), 8)
    b_pad = num_tiles * tile_b
    return tile_b, b_pad, num_tiles


def linear_network_forward(x_nchw, collapsed_params, *, max_tile_b=2048):
    """x_nchw: (B, 1, 28, 28) float32. Returns (B, 10) float32 logits."""
    wc, bc = collapsed_params
    B = x_nchw.shape[0]

    # Flatten only (free reshape); no dtype cast / K-pad HBM pass -- the kernel
    # reads the f32 (B, 784) rows directly.
    x = x_nchw.reshape(B, IN_FEATURES)

    tile_b, b_pad, num_tiles = _choose_tiling(B, max_tile_b)
    if b_pad != B:
        x = jnp.pad(x, ((0, b_pad - B), (0, 0)))

    # Per-step VMEM @ tile_b=2048: x 2x6.1 MiB + out 2x0.5 MiB (bf16)
    # + Wc 2x0.4 MiB + bc  ~= 14 MiB -> request 32 MiB scoped VMEM so the tile
    # fits with headroom on every generation (v7x physical is 64 MiB).
    cost = pl.CostEstimate(
        flops=2 * b_pad * IN_FEATURES * N_PAD,
        transcendentals=0,
        bytes_accessed=(b_pad * IN_FEATURES * 4          # x (f32)
                        + IN_FEATURES * N_PAD * 4        # Wc (f32, resident)
                        + N_PAD * 4                      # bc
                        + b_pad * N_PAD * 2))            # out (bf16)

    out = pl.pallas_call(
        mlp_kernel,
        out_shape=jax.ShapeDtypeStruct((b_pad, N_PAD), jnp.bfloat16),
        grid=(num_tiles,),
        in_specs=[
            pl.BlockSpec((tile_b, IN_FEATURES), lambda i: (i, 0)),  # x tile
            pl.BlockSpec((IN_FEATURES, N_PAD), lambda i: (0, 0)),   # Wc resident
            pl.BlockSpec((1, N_PAD), lambda i: (0, 0)),             # bc resident
        ],
        out_specs=pl.BlockSpec((tile_b, N_PAD), lambda i: (i, 0)),
        compiler_params=pltpu.CompilerParams(
            dimension_semantics=("parallel",),
            vmem_limit_bytes=32 * 1024 * 1024),
        cost_estimate=cost,
    )(x, wc, bc)

    # Padded batch rows hold bias-only values; the slice drops them.  The
    # upcast to f32 rides the slice copy (kernel writeback stays bf16).
    return out[:B, :OUT_FEATURES].astype(jnp.float32)


def init_params(key):
    """Deterministic init mimicking nn.Linear's U(-1/sqrt(fan_in), 1/sqrt(fan_in)).
    Weights stored as (in_features, out_features)."""
    dims = [(784, 128), (128, 32), (32, 10)]
    params = []
    for (fan_in, fan_out) in dims:
        key, kw, kb = jax.random.split(key, 3)
        bound = 1.0 / jnp.sqrt(jnp.float32(fan_in))
        w = jax.random.uniform(kw, (fan_in, fan_out), jnp.float32, -bound, bound)
        b = jax.random.uniform(kb, (1, fan_out), jnp.float32, -bound, bound)
        params += [w, b]
    return tuple(params)


def reference_forward(x_nchw, params):
    """Original 3-layer f32 forward (matches the PyTorch module semantics)."""
    w1, b1, w2, b2, w3, b3 = params
    x = x_nchw.reshape(x_nchw.shape[0], -1)
    h1 = x @ w1 + b1
    h2 = h1 @ w2 + b2
    return h2 @ w3 + b3


if __name__ == "__main__":
    key = jax.random.PRNGKey(0)
    params = init_params(key)
    collapsed = collapse_params(params)   # one-time weight fold + N-pad

    # Small MNIST-like input: batch=8, NCHW (8, 1, 28, 28) -> 784 pixels.
    key, kx1, kx2 = jax.random.split(key, 3)
    x_small = jax.random.normal(kx1, (8, 1, 28, 28), jnp.float32)

    out = jax.block_until_ready(linear_network_forward(x_small, collapsed))
    ref = jax.block_until_ready(reference_forward(x_small, params))
    assert out.shape == (8, 10) and out.dtype == jnp.float32
    # Layer collapse + MXU/bf16-output rounding vs. the f32 3-layer reference
    # -> loose tolerance.
    assert jnp.allclose(out, ref, atol=2e-2, rtol=2e-2), "mismatch (small batch)"

    # Exercise the multi-tile path (B > 128 -> 2 grid steps, batch padding).
    x_big = jax.random.normal(kx2, (200, 1, 28, 28), jnp.float32)
    out_b = jax.block_until_ready(linear_network_forward(x_big, collapsed))
    ref_b = jax.block_until_ready(reference_forward(x_big, params))
    assert out_b.shape == (200, 10)
    assert jnp.allclose(out_b, ref_b, atol=2e-2, rtol=2e-2), "mismatch (multi-tile)"

    print("KERNEL_OK")
</pallas_src>

<mosaic_0001>
module attributes {stable_mosaic.version = 11 : i64} {
  func.func @mlp_kernel(%arg0: i32, %arg1: memref<8x784xf32, #tpu.memory_space<vmem>>, %arg2: memref<784x128xf32, #tpu.memory_space<vmem>>, %arg3: memref<1x128xf32, #tpu.memory_space<vmem>>, %arg4: memref<8x128xbf16, #tpu.memory_space<vmem>>) attributes {dimension_semantics = [#tpu.dimension_semantics<parallel>], iteration_bounds = array<i64: 1>, scalar_prefetch = 0 : i64, scratch_operands = 0 : i64, tpu.core_type = #tpu.core_type<tc>, window_params = [{transform_indices = @transform_0, window_bounds = array<i64: 8, 784>}, {pipeline_mode = #tpu.pipeline_mode<synchronous>, transform_indices = @transform_1, window_bounds = array<i64: 784, 128>}, {pipeline_mode = #tpu.pipeline_mode<synchronous>, transform_indices = @transform_2, window_bounds = array<i64: 1, 128>}, {transform_indices = @transform_3, window_bounds = array<i64: 8, 128>}]} {
    %c0 = arith.constant 0 : index
    %c0_0 = arith.constant 0 : index
    %0 = vector.load %arg1[%c0, %c0_0] : memref<8x784xf32, #tpu.memory_space<vmem>>, vector<8x784xf32>
    %c0_1 = arith.constant 0 : index
    %c0_2 = arith.constant 0 : index
    %1 = vector.load %arg2[%c0_1, %c0_2] : memref<784x128xf32, #tpu.memory_space<vmem>>, vector<784x128xf32>
    %cst = arith.constant dense<0.000000e+00> : vector<8x128xf32>
    %2 = tpu.matmul %0, %1, %cst {dimension_numbers = #tpu.dot_dimension_numbers<[1], [0], [0], [1], [0, 0, 1, 1], [], []>} : vector<8x784xf32>, vector<784x128xf32>, vector<8x128xf32> -> vector<8x128xf32>
    %c0_3 = arith.constant 0 : index
    %c0_4 = arith.constant 0 : index
    %3 = vector.load %arg3[%c0_3, %c0_4] : memref<1x128xf32, #tpu.memory_space<vmem>>, vector<1x128xf32>
    %4 = vector.broadcast %3 : vector<1x128xf32> to vector<8x128xf32>
    %5 = arith.addf %2, %4 : vector<8x128xf32>
    %6 = arith.truncf %5 : vector<8x128xf32> to vector<8x128xbf16>
    %c0_5 = arith.constant 0 : index
    %c0_6 = arith.constant 0 : index
    %7 = vector.load %arg4[%c0_5, %c0_6] : memref<8x128xbf16, #tpu.memory_space<vmem>>, vector<8x128xbf16>
    tpu.vector_store %arg4[%c0_5, %c0_6], %6 {strides = array<i32>} : memref<8x128xbf16, #tpu.memory_space<vmem>>, vector<8x128xbf16>,
    return
  }
  func.func @transform_0(%arg0: i32) -> (i32, i32) {
    %c0_i32 = arith.constant 0 : i32
    %c0_i32_0 = arith.constant 0 : i32
    return %arg0, %c0_i32 : i32, i32
  }
  func.func @transform_1(%arg0: i32) -> (i32, i32) {
    %c0_i32 = arith.constant 0 : i32
    %c0_i32_0 = arith.constant 0 : i32
    %c0_i32_1 = arith.constant 0 : i32
    return %c0_i32, %c0_i32_0 : i32, i32
  }
  func.func @transform_2(%arg0: i32) -> (i32, i32) {
    %c0_i32 = arith.constant 0 : i32
    %c0_i32_0 = arith.constant 0 : i32
    %c0_i32_1 = arith.constant 0 : i32
    return %c0_i32, %c0_i32_0 : i32, i32
  }
  func.func @transform_3(%arg0: i32) -> (i32, i32) {
    %c0_i32 = arith.constant 0 : i32
    %c0_i32_0 = arith.constant 0 : i32
    return %arg0, %c0_i32 : i32, i32
  }
}

</mosaic_0001>

<bundles_post_ra>
// kernel: tpu_custom_call.1
= control target key start
LH: loop header
LB: loop body
LE: loop exit
PB: predicated region body
PF: predicated region fallthrough
CT: control target
= control target key end

     0   :  { %8 = vsyncpa [#allocation3], 0  ;;  %s825_s0 = inlined_call_operand.hbm [shape: f32[8,784], index: 0, kind: input, shape index: {}]   ;;  %s826_s1 = inlined_call_operand.hbm [shape: f32[784,128], index: 1, kind: input, shape index: {}]   ;;  %s827_s2 = inlined_call_operand.vmem [shape: f32[1,128], index: 2, kind: input, shape index: {}]   ;;  %s828_s3 = inlined_call_operand.hbm [shape: bf16[8,128], index: 3, kind: output, shape index: {}]  }
   0x1   :  { %9 = vsyncpa [#allocation6], 0 }
   0x2   :  { %10 = vsyncpa [#allocation4], 0  ;;  %s751_s12 = smov [#allocation2]   ;;  %s752_s14 = smov [#allocation5]  }
   0x3   :  { %s17_s13 = sshll.u32 %s751_s12, 4  ;;  %s26_s15 = sshll.u32 %s752_s14, 4  ;;  %s18_s13 = int_to_ptr.vmem [resolvable:$true] %s17_s13  ;;  %s779_s15 = int_to_ptr.vmem [resolvable:$true] %s26_s15 }
   0x4   :  { %s679_s18 = scalar_lea.hbm %s825_s0, 896 }
   0x5   :  { %p680_p0 = scmp.ne.s32.totalorder %s825_s0, %s679_s18  ;;  %p683_p1 = scmp.lt.u32.totalorder %s679_s18, %s825_s0 }
   0x7   :  { %p685_p2 = pnand %p683_p1, %p680_p0 }
   0x9   :  { %688 = shalt.err (!%p685_p2)
}
   0xa   :  { %s689_s23 = scalar_lea.vmem %s18_s13, 896  ;;  %p694_p4 = scmp.lt.s32.totalorder %s18_s13, %s18_s13 }
   0xb   :  { %p690_p3 = scmp.ne.s32.totalorder %s18_s13, %s689_s23  ;;  %p695_p5 = scmp.lt.s32.totalorder %s689_s23, %s689_s23 }
   0xd   :  { %p696_p6 = por %p695_p5, %p694_p4 }
   0xf   :  { %p697_p7 = pnand %p696_p6, %p690_p3 }
  0x11   :  { %700 = shalt.err (!%p697_p7)
}
  0x12   :  { %20 = dma.hbm_to_vmem [thread:$0]  %s825_s0, 896, %s18_s13, [#allocation3]  }
  0x13   :  { %s701_s28 = scalar_lea.hbm %s826_s1, 12544 }
  0x14   :  { %p702_p8 = scmp.ne.s32.totalorder %s826_s1, %s701_s28  ;;  %p705_p9 = scmp.lt.u32.totalorder %s701_s28, %s826_s1 }
  0x16   :  { %p707_p10 = pnand %p705_p9, %p702_p8 }
  0x18   :  { %710 = shalt.err (!%p707_p10)
}
  0x19   :  { %s711_s6 = scalar_lea.vmem %s779_s15, 12544  ;;  %p716_p12 = scmp.lt.s32.totalorder %s779_s15, %s779_s15 }
  0x1a   :  { %p712_p11 = scmp.ne.s32.totalorder %s779_s15, %s711_s6  ;;  %p717_p13 = scmp.lt.s32.totalorder %s711_s6, %s711_s6 }
  0x1c   :  { %p718_p0 = por %p717_p13, %p716_p12 }
  0x1e   :  { %p719_p1 = pnand %p718_p0, %p712_p11 }
  0x20   :  { %722 = shalt.err (!%p719_p1)
}
  0x21   :  { %s753_s0 = smov 128   ;;  %s754_s7 = smov 8  }
  0x22   :  { %32 = dma.hbm_to_vmem [thread:$0]  %s826_s1, 12544, %s779_s15, [#allocation6], %s753_s0, %s753_s0, %s754_s7  }
  0x23   :  { %745 = dma.done.wait [#allocation3], 896  }
  0x24   :  { %746 = vsyncadd [#allocation3], 4294966400 }
  0x25   :  { %747 = dma.done.wait [#allocation6], 12544  }
  0x26   :  { %748 = vsyncadd [#allocation6], 4294954752  ;;  %v64_v0 = vld [vmem:[#allocation5 + $0x80] sm:$0xff]  ;;  %v65_v1 = vld [vmem:[#allocation5 + $0x88] sm:$0xff]  ;;  %vm756_vm0 = vmmov 0   ;;  %vm153_vm1 = vcmask 130048  }
  0x27   :  { %v48_v2 = vld [vmem:[#allocation5] sm:$0xff]  ;;  %v572_v3 = vpack.c.bf16 %v65_v1, %v64_v0  ;;  %v49_v4 = vld [vmem:[#allocation5 + $0x8] sm:$0xff]  ;;  %v66_v11 = vld [vmem:[#allocation5 + $0x90] sm:$0xff]  ;;  %s758_s11 = smov [#allocation7]  }
  0x28   :  { %v96_v5 = vld [vmem:[#allocation5 + $0x180] sm:$0xff]  ;;  %v97_v6 = vld [vmem:[#allocation5 + $0x188] sm:$0xff]  ;;  %v574_v7 = vpack.c.bf16 %v49_v4, %v48_v2  ;;  %v67_v13 = vld [vmem:[#allocation5 + $0x98] sm:$0xff]  ;;  %s445_s12 = sshll.u32 %s758_s11, 4  ;;  %s446_s12 = int_to_ptr.vmem [resolvable:$true] %s445_s12 }
  0x29   :  { %v604_v8 = vpack.c.bf16 %v97_v6, %v96_v5  ;;  %v80_v9 = vld [vmem:[#allocation5 + $0x100] sm:$0xff]  ;;  %v81_v10 = vld [vmem:[#allocation5 + $0x108] sm:$0xff]  ;;  %573 = vmatprep.subr.bf16.mxu0 %v572_v3  ;;  %v50_v14 = vld [vmem:[#allocation5 + $0x10] sm:$0xff]  ;;  %v576_v16 = vpack.c.bf16 %v67_v13, %v66_v11  ;;  %p728_p3 = scmp.lt.s32.totalorder %s446_s12, %s446_s12 }
  0x2a   :  { %v606_v12 = vpack.c.bf16 %v81_v10, %v80_v9  ;;  %v51_v15 = vld [vmem:[#allocation5 + $0x18] sm:$0xff]  ;;  %575 = vmatpush3.bf16.msra.mxu0 %v574_v7  ;;  %v98_v18 = vld [vmem:[#allocation5 + $0x190] sm:$0xff]  ;;  %v68_v23 = vld [vmem:[#allocation5 + $0xa0] sm:$0xff] }
  0x2b   :  { %605 = vmatprep.subr.bf16.mxu1 %v604_v8  ;;  %v578_v17 = vpack.c.bf16 %v51_v15, %v50_v14  ;;  %v99_v19 = vld [vmem:[#allocation5 + $0x198] sm:$0xff]  ;;  %v82_v20 = vld [vmem:[#allocation5 + $0x110] sm:$0xff]  ;;  %v69_v24 = vld [vmem:[#allocation5 + $0xa8] sm:$0xff]  ;;  %577 = vmatprep.subr.bf16.mxu0 %v576_v16 }
  0x2c   :  { %607 = vmatpush3.bf16.msra.mxu1 %v606_v12  ;;  %v608_v21 = vpack.c.bf16 %v99_v19, %v98_v18  ;;  %v83_v22 = vld [vmem:[#allocation5 + $0x118] sm:$0xff]  ;;  %v580_v26 = vpack.c.bf16 %v69_v24, %v68_v23  ;;  %v52_v27 = vld [vmem:[#allocation5 + $0x20] sm:$0xff]  ;;  %v53_v28 = vld [vmem:[#allocation5 + $0x28] sm:$0xff] }
  0x2d   :  { %v610_v25 = vpack.c.bf16 %v83_v22, %v82_v20  ;;  %v100_v29 = vld [vmem:[#allocation5 + $0x1a0] sm:$0xff]  ;;  %v101_v30 = vld [vmem:[#allocation5 + $0x1a8] sm:$0xff]  ;;  %v582_v33 = vpack.c.bf16 %v53_v28, %v52_v27  ;;  %v70_v35 = vld [vmem:[#allocation5 + $0xb0] sm:$0xff] }
  0x2e   :  { %609 = vmatprep.subr.bf16.mxu1 %v608_v21  ;;  %v84_v31 = vld [vmem:[#allocation5 + $0x120] sm:$0xff]  ;;  %v85_v32 = vld [vmem:[#allocation5 + $0x128] sm:$0xff]  ;;  %579 = vmatpush3.bf16.msra.mxu0 %v578_v17  ;;  %v612_v34 = vpack.c.bf16 %v101_v30, %v100_v29  ;;  %v71_v36 = vld [vmem:[#allocation5 + $0xb8] sm:$0xff] }
  0x2f   :  { %v54_v37 = vld [vmem:[#allocation5 + $0x30] sm:$0xff]  ;;  %581 = vmatprep.subr.bf16.mxu0 %v580_v26  ;;  %v614_v38 = vpack.c.bf16 %v85_v32, %v84_v31  ;;  %v584_v39 = vpack.c.bf16 %v71_v36, %v70_v35  ;;  %v55_v40 = vld [vmem:[#allocation5 + $0x38] sm:$0xff]  ;;  %v72_v46 = vld [vmem:[#allocation5 + $0xc0] sm:$0xff] }
  0x30   :  { %611 = vmatpush3.bf16.msra.mxu1 %v610_v25  ;;  %v102_v41 = vld [vmem:[#allocation5 + $0x1b0] sm:$0xff]  ;;  %v103_v42 = vld [vmem:[#allocation5 + $0x1b8] sm:$0xff]  ;;  %v73_v47 = vld [vmem:[#allocation5 + $0xc8] sm:$0xff]  ;;  %v586_v48 = vpack.c.bf16 %v55_v40, %v54_v37 }
  0x31   :  { %613 = vmatprep.subr.bf16.mxu1 %v612_v34  ;;  %v616_v43 = vpack.c.bf16 %v103_v42, %v102_v41  ;;  %v86_v44 = vld [vmem:[#allocation5 + $0x130] sm:$0xff]  ;;  %v87_v45 = vld [vmem:[#allocation5 + $0x138] sm:$0xff]  ;;  %v104_v49 = vld [vmem:[#allocation5 + $0x1c0] sm:$0xff]  ;;  %v588_v52 = vpack.c.bf16 %v73_v47, %v72_v46 }
  0x32   :  { %583 = vmatpush3.bf16.msra.mxu0 %v582_v33  ;;  %v105_v50 = vld [vmem:[#allocation5 + $0x1c8] sm:$0xff]  ;;  %v618_v51 = vpack.c.bf16 %v87_v45, %v86_v44  ;;  %v56_v53 = vld [vmem:[#allocation5 + $0x40] sm:$0xff]  ;;  %v74_v58 = vld [vmem:[#allocation5 + $0xd0] sm:$0xff] }
  0x33   :  { %585 = vmatprep.subr.bf16.mxu0 %v584_v39  ;;  %v57_v54 = vld [vmem:[#allocation5 + $0x48] sm:$0xff]  ;;  %v88_v55 = vld [vmem:[#allocation5 + $0x140] sm:$0xff]  ;;  %v620_v56 = vpack.c.bf16 %v105_v50, %v104_v49  ;;  %v75_v59 = vld [vmem:[#allocation5 + $0xd8] sm:$0xff]  ;;  %v755_v50 = vmov 0.0|0.0  }
  0x34   :  { %615 = vmatpush3.bf16.msra.mxu1 %v614_v38  ;;  %v89_v57 = vld [vmem:[#allocation5 + $0x148] sm:$0xff]  ;;  %v106_v60 = vld [vmem:[#allocation5 + $0x1d0] sm:$0xff]  ;;  %v107_v61 = vld [vmem:[#allocation5 + $0x1d8] sm:$0xff]  ;;  %v590_v62 = vpack.c.bf16 %v57_v54, %v56_v53  ;;  %v592_v0 = vpack.c.bf16 %v75_v59, %v74_v58 }
  0x35   :  { %617 = vmatprep.subr.bf16.mxu1 %v616_v43  ;;  %v622_v63 = vpack.c.bf16 %v89_v57, %v88_v55  ;;  %v58_v1 = vld [vmem:[#allocation5 + $0x50] sm:$0xff]  ;;  %v59_v2 = vld [vmem:[#allocation5 + $0x58] sm:$0xff]  ;;  %v624_v4 = vpack.c.bf16 %v107_v61, %v106_v60  ;;  %v76_v6 = vld [vmem:[#allocation5 + $0xe0] sm:$0xff]  ;;  %v757_v60 = vmov 0.0  }
  0x36   :  { %587 = vmatpush3.bf16.msra.mxu0 %v586_v48  ;;  %v90_v3 = vld [vmem:[#allocation5 + $0x150] sm:$0xff]  ;;  %v91_v5 = vld [vmem:[#allocation5 + $0x158] sm:$0xff]  ;;  %v77_v7 = vld [vmem:[#allocation5 + $0xe8] sm:$0xff]  ;;  %v594_v10 = vpack.c.bf16 %v59_v2, %v58_v1 }
  0x37   :  { %589 = vmatprep.subr.bf16.mxu0 %v588_v52  ;;  %v108_v8 = vld [vmem:[#allocation5 + $0x1e0] sm:$0xff]  ;;  %v109_v9 = vld [vmem:[#allocation5 + $0x1e8] sm:$0xff]  ;;  %v42_v12 = vld [vmem:[#allocation2 + $0x8] sm:$0xff]  ;;  %v626_v13 = vpack.c.bf16 %v91_v5, %v90_v3  ;;  %v596_v14 = vpack.c.bf16 %v77_v7, %v76_v6 }
  0x38   :  { %619 = vmatpush3.bf16.msra.mxu1 %v618_v51  ;;  %v60_v11 = vld [vmem:[#allocation5 + $0x60] sm:$0xff]  ;;  %v61_v15 = vld [vmem:[#allocation5 + $0x68] sm:$0xff]  ;;  %v628_v18 = vpack.c.bf16 %v109_v9, %v108_v8  ;;  %v78_v19 = vld [vmem:[#allocation5 + $0xf0] sm:$0xff]  ;;  %221 = vmatprep.mubr.f32.mxu0 %v42_v12 }
  0x39   :  { %621 = vmatprep.subr.bf16.mxu1 %v620_v56  ;;  %v92_v16 = vld [vmem:[#allocation5 + $0x160] sm:$0xff]  ;;  %v93_v17 = vld [vmem:[#allocation5 + $0x168] sm:$0xff]  ;;  %v79_v20 = vld [vmem:[#allocation5 + $0xf8] sm:$0xff]  ;;  %v598_v24 = vpack.c.bf16 %v61_v15, %v60_v11 }
  0x3a   :  { %591 = vmatpush3.bf16.msra.mxu0 %v590_v62  ;;  %v44_v21 = vld [vmem:[#allocation2 + $0x18] sm:$0xff]  ;;  %v110_v22 = vld [vmem:[#allocation5 + $0x1f0] sm:$0xff]  ;;  %v111_v23 = vld [vmem:[#allocation5 + $0x1f8] sm:$0xff]  ;;  %v630_v25 = vpack.c.bf16 %v93_v17, %v92_v16  ;;  %v600_v26 = vpack.c.bf16 %v79_v20, %v78_v19 }
  0x3b   :  { %593 = vmatprep.subr.bf16.mxu0 %v592_v0  ;;  %291 = vmatprep.mubr.f32.mxu1 %v44_v21  ;;  %v62_v27 = vld [vmem:[#allocation5 + $0x70] sm:$0xff]  ;;  %v63_v28 = vld [vmem:[#allocation5 + $0x78] sm:$0xff]  ;;  %v632_v30 = vpack.c.bf16 %v111_v23, %v110_v22  ;;  %v128_v32 = vld [vmem:[#allocation5 + $0x280] sm:$0xff] }
  0x3c   :  { %623 = vmatpush3.bf16.msra.mxu1 %v622_v63  ;;  %v94_v29 = vld [vmem:[#allocation5 + $0x170] sm:$0xff]  ;;  %v95_v31 = vld [vmem:[#allocation5 + $0x178] sm:$0xff]  ;;  %v129_v33 = vld [vmem:[#allocation5 + $0x288] sm:$0xff]  ;;  %v602_v34 = vpack.c.bf16 %v63_v28, %v62_v27 }
  0x3d   :  { %625 = vmatprep.subr.bf16.mxu1 %v624_v4  ;;  %v634_v35 = vpack.c.bf16 %v95_v31, %v94_v29  ;;  %v636_v36 = vpack.c.bf16 %v129_v33, %v128_v32  ;;  %v112_v37 = vld [vmem:[#allocation5 + $0x200] sm:$0xff]  ;;  %v113_v38 = vld [vmem:[#allocation5 + $0x208] sm:$0xff]  ;;  %v130_v39 = vld [vmem:[#allocation5 + $0x290] sm:$0xff] }
  0x3e   :  { %595 = vmatpush3.bf16.msra.mxu0 %v594_v10  ;;  %v131_v40 = vld [vmem:[#allocation5 + $0x298] sm:$0xff]  ;;  %v41_v41 = vld [vmem:[#allocation2] sm:$0xff]  ;;  %v638_v42 = vpack.c.bf16 %v113_v38, %v112_v37  ;;  %v114_v44 = vld [vmem:[#allocation5 + $0x210] sm:$0xff] }
  0x3f   :  { %597 = vmatprep.subr.bf16.mxu0 %v596_v14  ;;  %v43_v43 = vld [vmem:[#allocation2 + $0x10] sm:$0xff]  ;;  %v640_v45 = vpack.c.bf16 %v131_v40, %v130_v39  ;;  %v132_v47 = vld [vmem:[#allocation5 + $0x2a0] sm:$0xff]  ;;  %v133_v48 = vld [vmem:[#allocation5 + $0x2a8] sm:$0xff] }
  0x40   :  { %627 = vmatpush3.bf16.msra.mxu1 %v626_v13  ;;  %v115_v46 = vld [vmem:[#allocation5 + $0x218] sm:$0xff]  ;;  %v46_v49 = vld [vmem:[#allocation2 + $0x28] sm:$0xff]  ;;  %v144_v51 = vld [vmem:[#allocation5 + $0x300] sm:$0xff]  ;;  %v644_v55 = vpack.c.bf16 %v133_v48, %v132_v47 }
  0x41   :  { %629 = vmatprep.subr.bf16.mxu1 %v628_v18  ;;  %v145_v52 = vld [vmem:[#allocation5 + $0x308] sm:$0xff]  ;;  %v642_v54 = vpack.c.bf16 %v115_v46, %v114_v44  ;;  %v116_v56 = vld [vmem:[#allocation5 + $0x220] sm:$0xff]  ;;  %v134_v58 = vld [vmem:[#allocation5 + $0x2b0] sm:$0xff] }
  0x42   :  { %599 = vmatpush3.bf16.msra.mxu0 %v598_v24  ;;  %v669_v53 = vpack.c.bf16 %v145_v52, %v144_v51  ;;  %v117_v57 = vld [vmem:[#allocation5 + $0x228] sm:$0xff]  ;;  %v135_v59 = vld [vmem:[#allocation5 + $0x2b8] sm:$0xff]  ;;  %v118_v0 = vld [vmem:[#allocation5 + $0x230] sm:$0xff] }
  0x43   :  { %601 = vmatprep.subr.bf16.mxu0 %v600_v26  ;;  %v47_v61 = vld [vmem:[#allocation2 + $0x30] sm:$0xff]  ;;  %v646_v62 = vpack.c.bf16 %v117_v57, %v116_v56  ;;  %v648_v63 = vpack.c.bf16 %v135_v59, %v134_v58  ;;  %v136_v2 = vld [vmem:[#allocation5 + $0x2c0] sm:$0xff]  ;;  %v137_v3 = vld [vmem:[#allocation5 + $0x2c8] sm:$0xff] }
  0x44   :  { %631 = vmatpush3.bf16.msra.mxu1 %v630_v25  ;;  %v119_v1 = vld [vmem:[#allocation5 + $0x238] sm:$0xff]  ;;  %v652_v5 = vpack.c.bf16 %v137_v3, %v136_v2  ;;  %v120_v6 = vld [vmem:[#allocation5 + $0x240] sm:$0xff]  ;;  %v121_v7 = vld [vmem:[#allocation5 + $0x248] sm:$0xff] }
  0x45   :  { %633 = vmatprep.subr.bf16.mxu1 %v632_v30  ;;  %v650_v4 = vpack.c.bf16 %v119_v1, %v118_v0  ;;  %v138_v8 = vld [vmem:[#allocation5 + $0x2d0] sm:$0xff]  ;;  %v139_v9 = vld [vmem:[#allocation5 + $0x2d8] sm:$0xff]  ;;  %v654_v10 = vpack.c.bf16 %v121_v7, %v120_v6  ;;  %v140_v14 = vld [vmem:[#allocation5 + $0x2e0] sm:$0xff] }
  0x46   :  { %603 = vmatpush3.bf16.msra.mxu0 %v602_v34  ;;  %v656_v11 = vpack.c.bf16 %v139_v9, %v138_v8  ;;  %v122_v12 = vld [vmem:[#allocation5 + $0x250] sm:$0xff]  ;;  %v123_v13 = vld [vmem:[#allocation5 + $0x258] sm:$0xff]  ;;  %v141_v15 = vld [vmem:[#allocation5 + $0x2e8] sm:$0xff] }
  0x47   :  { %637 = vmatprep.subr.bf16.mxu0 %v636_v36  ;;  %v658_v16 = vpack.c.bf16 %v123_v13, %v122_v12  ;;  %v660_v17 = vpack.c.bf16 %v141_v15, %v140_v14  ;;  %v124_v18 = vld [vmem:[#allocation5 + $0x260] sm:$0xff]  ;;  %v125_v19 = vld [vmem:[#allocation5 + $0x268] sm:$0xff]  ;;  %v142_v20 = vld [vmem:[#allocation5 + $0x2f0] sm:$0xff] }
  0x48   :  { %635 = vmatpush3.bf16.msra.mxu1 %v634_v35  ;;  %v143_v21 = vld [vmem:[#allocation5 + $0x2f8] sm:$0xff]  ;;  %v662_v22 = vpack.c.bf16 %v125_v19, %v124_v18  ;;  %v126_v24 = vld [vmem:[#allocation5 + $0x270] sm:$0xff]  ;;  %v45_v27 = vld [vmem:[#allocation2 + $0x20] sm:$0xff] }
  0x49   :  { %668 = vmatprep.subr.bf16.mxu1 %v755_v50  ;;  %222 = vmatmul.mubr.f32.vlgmr.msra.gmra.mrb[0].mxu0 %v41_v41  ;;  %v664_v23 = vpack.c.bf16 %v143_v21, %v142_v20  ;;  %v127_v25 = vld [vmem:[#allocation5 + $0x278] sm:$0xff]  ;;  %v455_v29 = vld [vmem:[%s827_s2] ss:$0 sm:$0xff]  ;;  %s723_s2 = scalar_lea.vmem %s446_s12, 64 }
  0x4a   :  { %639 = vmatpush3.bf16.msra.mxu0 %v638_v42  ;;  %361 = vmatprep.mubr.f32.mxu0 %v46_v49  ;;  %v666_v26 = vpack.c.bf16 %v127_v25, %v126_v24  ;;  %p724_p2 = scmp.ne.s32.totalorder %s446_s12, %s723_s2  ;;  %p729_p4 = scmp.lt.s32.totalorder %s723_s2, %s723_s2 }
  0x4b   :  { %292 = vmatmul.mubr.f32.vlgmr.msra.gmra.mrb[0].mxu1 %v43_v43  ;;  %641 = vmatprep.subr.bf16.mxu0 %v640_v45 }
  0x4c   :  { %670 = vmatpush3.bf16.msra.mxu1 %v669_v53  ;;  %569 = vmatprep.mubr.msk.f32.mxu1 %vm756_vm0, %v757_v60  ;;  %p730_p5 = por %p729_p4, %p728_p3 }
  0x4e   :  { %643 = vmatpush3.bf16.msra.mxu0 %v642_v54  ;;  %p731_p6 = pnand %p730_p5, %p724_p2 }
  0x4f   :  { %645 = vmatprep.subr.bf16.mxu0 %v644_v55  ;;  %570 = vmatmul.mubr.msk.f32.vlgmr.msra.gmra.mrb[2].mxu1 %vm153_vm1, %v47_v61 }
  0x52   :  { %647 = vmatpush3.bf16.msra.mxu0 %v646_v62 }
  0x53   :  { %649 = vmatprep.subr.bf16.mxu0 %v648_v63 }
  0x56   :  { %651 = vmatpush3.bf16.msra.mxu0 %v650_v4 }
  0x57   :  { %653 = vmatprep.subr.bf16.mxu0 %v652_v5 }
  0x5a   :  { %655 = vmatpush3.bf16.msra.mxu0 %v654_v10 }
  0x5b   :  { %657 = vmatprep.subr.bf16.mxu0 %v656_v11 }
  0x5e   :  { %659 = vmatpush3.bf16.msra.mxu0 %v658_v16 }
  0x5f   :  { %661 = vmatprep.subr.bf16.mxu0 %v660_v17 }
  0x62   :  { %663 = vmatpush3.bf16.msra.mxu0 %v662_v22 }
  0x63   :  { %665 = vmatprep.subr.bf16.mxu0 %v664_v23 }
  0x66   :  { %667 = vmatpush3.bf16.msra.mxu0 %v666_v26 }
  0x69   :  { %362 = vmatmul.mubr.f32.vlgmr.msra.gmra.mrb[2].mxu0 %v45_v27 }
 0x11c   :  { %v489_v28 = vpop.f32.mrb[0].mxu0 }
 0x11d   :  { %v490_v30 = vpop.f32.mrb[1].mxu0 }
 0x11e   :  { %v524_v31 = vpop.f32.mrb[0].mxu1  ;;  %v491_v32 = vadd.f32 %v490_v30, %v489_v28 }
 0x11f   :  { %v525_v33 = vpop.f32.mrb[1].mxu1 }
 0x120   :  { %v526_v34 = vadd.f32 %v525_v33, %v524_v31  ;;  %v224_v35 = vadd.f32 %v491_v32, %v455_v29 }
 0x122   :  { %v294_v36 = vadd.f32 %v526_v34, %v224_v35  ;;  %v433_v37 = vpop.f32.mrb[2].mxu1 }
 0x123   :  { %v571_v38 = vpop.f32.mrb[3].mxu1 }
 0x13c   :  { %v559_v39 = vpop.f32.mrb[2].mxu0 }
 0x13d   :  { %v560_v40 = vpop.f32.mrb[3].mxu0 }
 0x13e   :  { %v561_v41 = vadd.f32 %v560_v40, %v559_v39 }
 0x140   :  { %v364_v42 = vadd.f32 %v561_v41, %v294_v36 }
 0x142   :  { %v434_v43 = vadd.f32 %v433_v37, %v364_v42 }
 0x144   :  { %v437_v44 = vpack.c.bf16 %v434_v43, %v434_v43 }
 0x146   :  { %438 = vst [vmem:[#allocation7] sm:$0xf] %v437_v44 }
 0x147   :  { %734 = shalt.err (!%p731_p6)
}
 0x148   :  { %s735_s15 = scalar_lea.hbm %s828_s3, 64 }
 0x149   :  { %p736_p7 = scmp.ne.s32.totalorder %s828_s3, %s735_s15  ;;  %p739_p8 = scmp.lt.u32.totalorder %s735_s15, %s828_s3 }
 0x14b   :  { %p741_p9 = pnand %p739_p8, %p736_p7 }
 0x14d   :  { %744 = shalt.err (!%p741_p9)
}
 0x14e   :  { %448 = dma.vmem_to_hbm [thread:$0]  %s446_s12, 64, %s828_s3, [#allocation4]  }
 0x14f   :  { %749 = dma.done.wait [#allocation4], 64  }
 0x150   :  { %750 = vsyncadd [#allocation4], 4294967232 }
 0x151   :  { %452 = vsyncpa [#allocation3], 1 }
 0x152   :  { %453 = vsyncpa [#allocation6], 1 }
 0x153   :  { %454 = vsyncpa [#allocation4], 1 }

</bundles_post_ra>
